<compile_context>
chip_gen: v7x
topology: tpu7x:2x2x1
jax: 0.10.0
libtpu: 0.0.40
codegen_flags: <defaults>
</compile_context>

<pallas_src>
import functools
import math

import jax
import jax.numpy as jnp
from jax import lax
from jax.experimental import pallas as pl
from jax.experimental.pallas import tpu as pltpu

_INV_SQRT2 = 1.0 / math.sqrt(2.0)


def _gelu(h, approximate):
    if approximate:
        # tanh approximation: one EUP tanh (free slot) + a few VALU ops.
        # Cheaper on v6e/v7x but numerically different from torch's default.
        return jax.nn.gelu(h, approximate=True)
    # Exact erf-based GELU (matches torch.nn.GELU default).
    # NOTE: lax.erf lowers to a VPU polynomial (VALU work), not the EUP.
    return 0.5 * h * (1.0 + lax.erf(h * _INV_SQRT2))


def _mlp_kernel_resident(x_ref, w1_ref, b1_ref, w2_ref, b2_ref, o_ref, *,
                         approximate):
    # Full W1/W2 resident in VMEM; single pass per token tile, no accumulator.
    h = jnp.dot(x_ref[...], w1_ref[...], preferred_element_type=jnp.float32)
    h = _gelu(h + b1_ref[...].astype(jnp.float32), approximate)
    # dropout(p=0.0) is identity -> no-op.
    out = jnp.dot(h.astype(w2_ref.dtype), w2_ref[...],
                  preferred_element_type=jnp.float32)
    o_ref[...] = (out + b2_ref[...].astype(jnp.float32)).astype(o_ref.dtype)


def _mlp_kernel_streamed(x_ref, w1_ref, b1_ref, w2_ref, b2_ref, o_ref,
                         acc_ref, *, approximate):
    # Hidden dimension streamed through VMEM; f32 accumulator in scratch.
    k = pl.program_id(1)

    @pl.when(k == 0)
    def _():
        acc_ref[...] = jnp.zeros_like(acc_ref)

    h = jnp.dot(x_ref[...], w1_ref[...], preferred_element_type=jnp.float32)
    h = _gelu(h + b1_ref[...].astype(jnp.float32), approximate)
    # dropout(p=0.0) is identity -> no-op.
    acc_ref[...] += jnp.dot(h.astype(w2_ref.dtype), w2_ref[...],
                            preferred_element_type=jnp.float32)

    @pl.when(k == pl.num_programs(1) - 1)
    def _():
        o_ref[...] = (acc_ref[...] + b2_ref[...].astype(jnp.float32)
                      ).astype(o_ref.dtype)


def _round_up(x, m):
    return (x + m - 1) // m * m


def _vmem_budget_bytes():
    """Generation-aware scoped-VMEM budget with headroom for Mosaic scratch."""
    try:
        cap = int(pltpu.get_tpu_info().vmem_capacity_bytes)
    except Exception:
        cap = 64 << 20  # conservative fallback (v7x-sized VMEM)
    # ~78%: ~50 MiB on v7x (64 MiB physical), ~100 MiB on v5e/v6e (128 MiB).
    return int(cap * 0.78)


def mlp_pallas(x, w1, b1, w2, b2, *, tile_m=1024, tile_h=1024,
               approximate_gelu=False):
    """Fused MLP: GELU(x @ w1 + b1) @ w2 + b2   (dropout p=0 -> identity).

    x: (T, D_in); w1: (D_in, D_h); w2: (D_h, D_out).  Weights are stored as
    (in, out), i.e. the transpose of torch.nn.Linear's weight attribute.
    """
    T, D_in = x.shape
    D_h = w1.shape[1]
    D_out = w2.shape[1]
    dtype = x.dtype
    bpe = jnp.dtype(dtype).itemsize
    sub = 16 if bpe < 4 else 8  # sublane packing: bf16 rows travel in pairs

    budget = _vmem_budget_bytes()

    # Lane-dense output: pad D_out to a multiple of 128 so output stores are
    # unmasked vst.  Padded W2 columns / b2 entries are zero -> padded output
    # columns are exactly zero and sliced off at the end.
    D_out_p = _round_up(D_out, 128)
    if D_out_p != D_out:
        w2 = jnp.pad(w2, ((0, 0), (0, D_out_p - D_out)))
        b2 = jnp.pad(b2, ((0, D_out_p - D_out),))

    # ---- token tile ---------------------------------------------------------
    t_aligned = _round_up(T, sub)
    tm = min(tile_m, t_aligned)
    if tm == t_aligned and T >= 512:
        # One tile would cover all tokens: split so the "parallel" token axis
        # has >= 2 tiles and both v7x TensorCores get work (no-op on v5e/v6e).
        tm = _round_up((t_aligned + 1) // 2, sub)
    tm = max(sub, (tm // sub) * sub)

    def resident_step_bytes(tm_):
        # Double-buffered tiles (conservative: also counts weights twice) plus
        # the (tm, D_h) f32 activation intermediate and its cast copy.
        return (2 * bpe * (tm_ * D_in + D_in * D_h + D_h
                           + D_h * D_out_p + D_out_p + tm_ * D_out_p)
                + tm_ * D_h * (4 + bpe))

    use_resident = resident_step_bytes(tm) <= budget

    if use_resident:
        w1_p, b1_p, w2_p, b2_p = w1, b1, w2, b2
        D_h_p, th = D_h, D_h
    else:
        # ---- streamed path: pad D_h to a 256-multiple (exact: GELU(0) = 0
        # and zero W2 rows contribute nothing), then tile the hidden axis.
        D_h_p = _round_up(D_h, 256)
        pad_h = D_h_p - D_h
        w1_p = jnp.pad(w1, ((0, 0), (0, pad_h))) if pad_h else w1
        b1_p = jnp.pad(b1, ((0, pad_h),)) if pad_h else b1
        w2_p = jnp.pad(w2, ((0, pad_h), (0, 0))) if pad_h else w2
        b2_p = b2

        def streamed_step_bytes(tm_, th_):
            return (2 * bpe * (tm_ * D_in + D_in * th_ + th_ + th_ * D_out_p
                               + D_out_p + tm_ * D_out_p)
                    + 4 * tm_ * D_out_p            # f32 accumulator scratch
                    + tm_ * th_ * (4 + bpe))       # activation intermediate

        cands = [c for c in (4096, 2048, 1024, 512, 256)
                 if c <= min(tile_h, D_h_p) and D_h_p % c == 0] or [256]
        th = next((c for c in cands if streamed_step_bytes(tm, c) <= budget),
                  cands[-1])
        while streamed_step_bytes(tm, th) > budget and tm > max(sub, 128):
            tm = max(max(sub, 128), _round_up(tm // 2, sub))

    T_pad = _round_up(T, tm)
    if T_pad != T:
        x = jnp.pad(x, ((0, T_pad - T), (0, 0)))
    n_tok = T_pad // tm

    b1_2d = b1_p.reshape(1, D_h_p)
    b2_2d = b2_p.reshape(1, D_out_p)

    flops = 2 * T_pad * D_in * D_h_p + 2 * T_pad * D_h_p * D_out_p

    if use_resident:
        kernel = functools.partial(_mlp_kernel_resident,
                                   approximate=approximate_gelu)
        grid = (n_tok,)
        in_specs = [
            pl.BlockSpec((tm, D_in), lambda i: (i, 0)),        # x tile
            pl.BlockSpec((D_in, D_h_p), lambda i: (0, 0)),     # W1 (resident)
            pl.BlockSpec((1, D_h_p), lambda i: (0, 0)),        # b1 (resident)
            pl.BlockSpec((D_h_p, D_out_p), lambda i: (0, 0)),  # W2 (resident)
            pl.BlockSpec((1, D_out_p), lambda i: (0, 0)),      # b2 (resident)
        ]
        out_specs = pl.BlockSpec((tm, D_out_p), lambda i: (i, 0))
        scratch_shapes = []
        dim_sem = ("parallel",)
        # Weights DMA'd once; x and out streamed once each.
        bytes_accessed = bpe * (T_pad * D_in + D_in * D_h_p + D_h_p
                                + D_h_p * D_out_p + D_out_p + T_pad * D_out_p)
        vmem_needed = resident_step_bytes(tm)
    else:
        kernel = functools.partial(_mlp_kernel_streamed,
                                   approximate=approximate_gelu)
        n_h = D_h_p // th
        grid = (n_tok, n_h)                                    # reduction last
        in_specs = [
            pl.BlockSpec((tm, D_in), lambda i, k: (i, 0)),     # x tile
            pl.BlockSpec((D_in, th), lambda i, k: (0, k)),     # W1 hidden tile
            pl.BlockSpec((1, th), lambda i, k: (0, k)),        # b1 hidden tile
            pl.BlockSpec((th, D_out_p), lambda i, k: (k, 0)),  # W2 hidden tile
            pl.BlockSpec((1, D_out_p), lambda i, k: (0, 0)),   # b2
        ]
        out_specs = pl.BlockSpec((tm, D_out_p), lambda i, k: (i, 0))
        scratch_shapes = [pltpu.VMEM((tm, D_out_p), jnp.float32)]
        dim_sem = ("parallel", "arbitrary")
        # Under this schedule W1/W2/b1 are re-read once per token tile.
        bytes_accessed = (bpe * n_tok * (D_in * D_h_p + D_h_p + D_h_p * D_out_p)
                          + bpe * (T_pad * D_in + D_out_p + T_pad * D_out_p))
        vmem_needed = streamed_step_bytes(tm, th)

    vmem_limit = int(min(budget, max(32 << 20, vmem_needed + (4 << 20))))

    out = pl.pallas_call(
        kernel,
        out_shape=jax.ShapeDtypeStruct((T_pad, D_out_p), dtype),
        grid_spec=pltpu.PrefetchScalarGridSpec(
            num_scalar_prefetch=0,
            grid=grid,
            in_specs=in_specs,
            out_specs=out_specs,
            scratch_shapes=scratch_shapes,
        ),
        compiler_params=pltpu.CompilerParams(
            dimension_semantics=dim_sem,
            vmem_limit_bytes=vmem_limit,
        ),
        cost_estimate=pl.CostEstimate(
            flops=int(flops),
            transcendentals=int(T_pad * D_h_p),
            bytes_accessed=int(bytes_accessed),
        ),
    )(x, w1_p, b1_2d, w2_p, b2_2d)

    return out[:T, :D_out]


def mlp_forward(x, w1, b1, w2, b2, **kw):
    """Accepts (..., in_features) like the PyTorch module."""
    lead = x.shape[:-1]
    out = mlp_pallas(x.reshape(-1, x.shape[-1]), w1, b1, w2, b2, **kw)
    return out.reshape(*lead, out.shape[-1])


def init_mlp_params(key, in_features, hidden_features, out_features,
                    dtype=jnp.float32):
    """torch.nn.Linear-style init (uniform +-1/sqrt(fan_in)); weights stored
    as (in, out) == W.T."""
    k1, k2, k3, k4 = jax.random.split(key, 4)
    bound1 = 1.0 / math.sqrt(in_features)
    bound2 = 1.0 / math.sqrt(hidden_features)
    w1 = jax.random.uniform(k1, (in_features, hidden_features),
                            minval=-bound1, maxval=bound1, dtype=dtype)
    b1 = jax.random.uniform(k2, (hidden_features,),
                            minval=-bound1, maxval=bound1, dtype=dtype)
    w2 = jax.random.uniform(k3, (hidden_features, out_features),
                            minval=-bound2, maxval=bound2, dtype=dtype)
    b2 = jax.random.uniform(k4, (out_features,),
                            minval=-bound2, maxval=bound2, dtype=dtype)
    return w1, b1, w2, b2


def mlp_reference(x, w1, b1, w2, b2):
    h = jnp.dot(x, w1, precision=lax.Precision.HIGHEST) + b1
    h = 0.5 * h * (1.0 + lax.erf(h * _INV_SQRT2))
    return jnp.dot(h, w2, precision=lax.Precision.HIGHEST) + b2


if __name__ == "__main__":
    key = jax.random.PRNGKey(0)
    kx, kp = jax.random.split(key)

    batch, seq = 2, 8
    in_features, hidden_features, out_features = 32, 64, 32

    x = jax.random.normal(kx, (batch, seq, in_features), dtype=jnp.float32)
    w1, b1, w2, b2 = init_mlp_params(kp, in_features, hidden_features,
                                     out_features)

    out = mlp_forward(x, w1, b1, w2, b2)
    jax.block_until_ready(out)

    ref = mlp_reference(x.reshape(-1, in_features), w1, b1, w2, b2)
    ref = ref.reshape(batch, seq, out_features)
    assert out.shape == ref.shape, "shape mismatch vs reference"
    assert jnp.allclose(out, ref, atol=1e-3, rtol=1e-3), "mismatch vs reference"

    print("KERNEL_OK")
</pallas_src>

<mosaic_0001>
module attributes {stable_mosaic.version = 11 : i64} {
  func.func @_mlp_kernel_resident(%arg0: i32, %arg1: memref<16x32xf32, #tpu.memory_space<vmem>>, %arg2: memref<32x64xf32, #tpu.memory_space<vmem>>, %arg3: memref<1x64xf32, #tpu.memory_space<vmem>>, %arg4: memref<64x128xf32, #tpu.memory_space<vmem>>, %arg5: memref<1x128xf32, #tpu.memory_space<vmem>>, %arg6: memref<16x128xf32, #tpu.memory_space<vmem>>) attributes {dimension_semantics = [#tpu.dimension_semantics<parallel>], iteration_bounds = array<i64: 1>, scalar_prefetch = 0 : i64, scratch_operands = 0 : i64, tpu.core_type = #tpu.core_type<tc>, window_params = [{transform_indices = @transform_0, window_bounds = array<i64: 16, 32>}, {pipeline_mode = #tpu.pipeline_mode<synchronous>, transform_indices = @transform_1, window_bounds = array<i64: 32, 64>}, {pipeline_mode = #tpu.pipeline_mode<synchronous>, transform_indices = @transform_2, window_bounds = array<i64: 1, 64>}, {pipeline_mode = #tpu.pipeline_mode<synchronous>, transform_indices = @transform_3, window_bounds = array<i64: 64, 128>}, {pipeline_mode = #tpu.pipeline_mode<synchronous>, transform_indices = @transform_4, window_bounds = array<i64: 1, 128>}, {transform_indices = @transform_5, window_bounds = array<i64: 16, 128>}]} {
    %c0 = arith.constant 0 : index
    %c0_0 = arith.constant 0 : index
    %0 = vector.load %arg1[%c0, %c0_0] : memref<16x32xf32, #tpu.memory_space<vmem>>, vector<16x32xf32>
    %c0_1 = arith.constant 0 : index
    %c0_2 = arith.constant 0 : index
    %1 = vector.load %arg2[%c0_1, %c0_2] : memref<32x64xf32, #tpu.memory_space<vmem>>, vector<32x64xf32>
    %cst = arith.constant dense<0.000000e+00> : vector<16x64xf32>
    %2 = tpu.matmul %0, %1, %cst {dimension_numbers = #tpu.dot_dimension_numbers<[1], [0], [0], [1], [0, 0, 1, 1], [], []>} : vector<16x32xf32>, vector<32x64xf32>, vector<16x64xf32> -> vector<16x64xf32>
    %c0_3 = arith.constant 0 : index
    %c0_4 = arith.constant 0 : index
    %3 = vector.load %arg3[%c0_3, %c0_4] : memref<1x64xf32, #tpu.memory_space<vmem>>, vector<1x64xf32>
    %4 = vector.broadcast %3 : vector<1x64xf32> to vector<16x64xf32>
    %5 = arith.addf %2, %4 : vector<16x64xf32>
    %cst_5 = arith.constant 5.000000e-01 : f32
    %6 = vector.broadcast %cst_5 : f32 to vector<16x64xf32>
    %7 = arith.mulf %6, %5 : vector<16x64xf32>
    %cst_6 = arith.constant 0.707106769 : f32
    %8 = vector.broadcast %cst_6 : f32 to vector<16x64xf32>
    %9 = arith.mulf %5, %8 : vector<16x64xf32>
    %10 = math.erf %9 : vector<16x64xf32>
    %cst_7 = arith.constant 1.000000e+00 : f32
    %11 = vector.broadcast %cst_7 : f32 to vector<16x64xf32>
    %12 = arith.addf %11, %10 : vector<16x64xf32>
    %13 = arith.mulf %7, %12 : vector<16x64xf32>
    %c0_8 = arith.constant 0 : index
    %c0_9 = arith.constant 0 : index
    %14 = vector.load %arg4[%c0_8, %c0_9] : memref<64x128xf32, #tpu.memory_space<vmem>>, vector<64x128xf32>
    %cst_10 = arith.constant dense<0.000000e+00> : vector<16x128xf32>
    %15 = tpu.matmul %13, %14, %cst_10 {dimension_numbers = #tpu.dot_dimension_numbers<[1], [0], [0], [1], [0, 0, 1, 1], [], []>} : vector<16x64xf32>, vector<64x128xf32>, vector<16x128xf32> -> vector<16x128xf32>
    %c0_11 = arith.constant 0 : index
    %c0_12 = arith.constant 0 : index
    %16 = vector.load %arg5[%c0_11, %c0_12] : memref<1x128xf32, #tpu.memory_space<vmem>>, vector<1x128xf32>
    %17 = vector.broadcast %16 : vector<1x128xf32> to vector<16x128xf32>
    %18 = arith.addf %15, %17 : vector<16x128xf32>
    %c0_13 = arith.constant 0 : index
    %c0_14 = arith.constant 0 : index
    %19 = vector.load %arg6[%c0_13, %c0_14] : memref<16x128xf32, #tpu.memory_space<vmem>>, vector<16x128xf32>
    tpu.vector_store %arg6[%c0_13, %c0_14], %18 {strides = array<i32>} : memref<16x128xf32, #tpu.memory_space<vmem>>, vector<16x128xf32>,
    return
  }
  func.func @transform_0(%arg0: i32) -> (i32, i32) {
    %c0_i32 = arith.constant 0 : i32
    %c0_i32_0 = arith.constant 0 : i32
    return %arg0, %c0_i32 : i32, i32
  }
  func.func @transform_1(%arg0: i32) -> (i32, i32) {
    %c0_i32 = arith.constant 0 : i32
    %c0_i32_0 = arith.constant 0 : i32
    %c0_i32_1 = arith.constant 0 : i32
    return %c0_i32, %c0_i32_0 : i32, i32
  }
  func.func @transform_2(%arg0: i32) -> (i32, i32) {
    %c0_i32 = arith.constant 0 : i32
    %c0_i32_0 = arith.constant 0 : i32
    %c0_i32_1 = arith.constant 0 : i32
    return %c0_i32, %c0_i32_0 : i32, i32
  }
  func.func @transform_3(%arg0: i32) -> (i32, i32) {
    %c0_i32 = arith.constant 0 : i32
    %c0_i32_0 = arith.constant 0 : i32
    %c0_i32_1 = arith.constant 0 : i32
    return %c0_i32, %c0_i32_0 : i32, i32
  }
  func.func @transform_4(%arg0: i32) -> (i32, i32) {
    %c0_i32 = arith.constant 0 : i32
    %c0_i32_0 = arith.constant 0 : i32
    %c0_i32_1 = arith.constant 0 : i32
    return %c0_i32, %c0_i32_0 : i32, i32
  }
  func.func @transform_5(%arg0: i32) -> (i32, i32) {
    %c0_i32 = arith.constant 0 : i32
    %c0_i32_0 = arith.constant 0 : i32
    return %arg0, %c0_i32 : i32, i32
  }
}

</mosaic_0001>

<bundles_post_ra>
// kernel: tpu_custom_call.1
= control target key start
LH: loop header
LB: loop body
LE: loop exit
PB: predicated region body
PF: predicated region fallthrough
CT: control target
= control target key end

     0   :  { %10 = vsyncpa [#allocation3], 0  ;;  %s573_s0 = inlined_call_operand.hbm [shape: f32[16,32], index: 0, kind: input, shape index: {}]   ;;  %s574_s1 = inlined_call_operand.hbm [shape: f32[32,64], index: 1, kind: input, shape index: {}]   ;;  %s575_s2 = inlined_call_operand.vmem [shape: f32[1,64], index: 2, kind: input, shape index: {}]   ;;  %s576_s3 = inlined_call_operand.hbm [shape: f32[64,128], index: 3, kind: input, shape index: {}]   ;;  %s577_s4 = inlined_call_operand.vmem [shape: f32[1,128], index: 4, kind: input, shape index: {}]   ;;  %s578_s5 = inlined_call_operand.hbm [shape: f32[16,128], index: 5, kind: output, shape index: {}]  }
   0x1   :  { %11 = vsyncpa [#allocation6], 0 }
   0x2   :  { %12 = vsyncpa [#allocation4], 0  ;;  %s464_s18 = smov [#allocation5]   ;;  %s465_s20 = smov [#allocation2]  }
   0x3   :  { %s30_s19 = sshll.u32 %s464_s18, 4  ;;  %s18_s21 = sshll.u32 %s465_s20, 4  ;;  %s31_s19 = int_to_ptr.vmem [resolvable:$true] %s30_s19  ;;  %s500_s21 = int_to_ptr.vmem [resolvable:$true] %s18_s21 }
   0x4   :  { %s370_s24 = scalar_lea.hbm %s574_s1, 512 }
   0x5   :  { %p371_p0 = scmp.ne.s32.totalorder %s574_s1, %s370_s24  ;;  %p374_p1 = scmp.lt.u32.totalorder %s370_s24, %s574_s1 }
   0x7   :  { %p376_p2 = pnand %p374_p1, %p371_p0 }
   0x9   :  { %379 = shalt.err (!%p376_p2)
}
   0xa   :  { %s380_s29 = scalar_lea.vmem %s31_s19, 512  ;;  %p385_p4 = scmp.lt.s32.totalorder %s31_s19, %s31_s19 }
   0xb   :  { %p381_p3 = scmp.ne.s32.totalorder %s31_s19, %s380_s29  ;;  %p386_p5 = scmp.lt.s32.totalorder %s380_s29, %s380_s29 }
   0xd   :  { %p387_p6 = por %p386_p5, %p385_p4 }
   0xf   :  { %p388_p7 = pnand %p387_p6, %p381_p3 }
  0x11   :  { %391 = shalt.err (!%p388_p7)
}
  0x12   :  { %s466_s30 = smov 128   ;;  %s467_s6 = smov 8  }
  0x13   :  { %36 = dma.hbm_to_vmem [thread:$0]  %s574_s1, 512, %s31_s19, [#allocation6], %s466_s30, %s466_s30, %s467_s6  }
  0x14   :  { %s392_s11 = scalar_lea.hbm %s573_s0, 256 }
  0x15   :  { %p393_p8 = scmp.ne.s32.totalorder %s573_s0, %s392_s11  ;;  %p396_p9 = scmp.lt.u32.totalorder %s392_s11, %s573_s0 }
  0x17   :  { %p398_p10 = pnand %p396_p9, %p393_p8 }
  0x19   :  { %401 = shalt.err (!%p398_p10)
}
  0x1a   :  { %s402_s16 = scalar_lea.vmem %s500_s21, 256  ;;  %p407_p12 = scmp.lt.s32.totalorder %s500_s21, %s500_s21 }
  0x1b   :  { %p403_p11 = scmp.ne.s32.totalorder %s500_s21, %s402_s16  ;;  %p408_p13 = scmp.lt.s32.totalorder %s402_s16, %s402_s16 }
  0x1d   :  { %p409_p0 = por %p408_p13, %p407_p12 }
  0x1f   :  { %p410_p1 = pnand %p409_p0, %p403_p11 }
  0x21   :  { %413 = shalt.err (!%p410_p1)
}
  0x22   :  { %24 = dma.hbm_to_vmem [thread:$0]  %s573_s0, 256, %s500_s21, [#allocation3], %s466_s30, %s466_s30, %s467_s6  }
  0x23   :  { %s468_s18 = smov [#allocation7]   ;;  %s414_s23 = scalar_lea.hbm %s576_s3, 1024 }
  0x24   :  { %s44_s19 = sshll.u32 %s468_s18, 4  ;;  %p415_p2 = scmp.ne.s32.totalorder %s576_s3, %s414_s23  ;;  %s45_s19 = int_to_ptr.vmem [resolvable:$true] %s44_s19 }
  0x25   :  { %p418_p3 = scmp.lt.u32.totalorder %s414_s23, %s576_s3 }
  0x27   :  { %p420_p4 = pnand %p418_p3, %p415_p2 }
  0x29   :  { %423 = shalt.err (!%p420_p4)
}
  0x2a   :  { %s424_s28 = scalar_lea.vmem %s45_s19, 1024  ;;  %p429_p6 = scmp.lt.s32.totalorder %s45_s19, %s45_s19 }
  0x2b   :  { %p425_p5 = scmp.ne.s32.totalorder %s45_s19, %s424_s28  ;;  %p430_p7 = scmp.lt.s32.totalorder %s424_s28, %s424_s28 }
  0x2d   :  { %p431_p8 = por %p430_p7, %p429_p6 }
  0x2f   :  { %p432_p9 = pnand %p431_p8, %p425_p5 }
  0x31   :  { %435 = shalt.err (!%p432_p9)
}
  0x32   :  { %50 = dma.hbm_to_vmem [thread:$0]  %s576_s3, 1024, %s45_s19, [#allocation6], %s466_s30, %s466_s30, %s467_s6  }
  0x33   :  { %458 = dma.done.wait [#allocation3], 256  }
  0x34   :  { %459 = vsyncadd [#allocation3], 4294967040 }
  0x35   :  { %460 = dma.done.wait [#allocation6], 1536  }
  0x36   :  { %461 = vsyncadd [#allocation6], 4294965760  ;;  %vm75_vm0 = vcmask 261120   ;;  %v64_v0 = vld [vmem:[#allocation5] sm:$0xff]  ;;  %v65_v1 = vld [vmem:[#allocation5 + $0x8] sm:$0xff]  ;;  %vm182_vm1 = vcmask 523264  }
  0x37   :  { %v66_v2 = vld [vmem:[#allocation5 + $0x10] sm:$0xff]  ;;  %v336_v3 = vpack.c.bf16 %v65_v1, %v64_v0  ;;  %v67_v4 = vld [vmem:[#allocation5 + $0x18] sm:$0xff]  ;;  %v167_v8 = vld [vmem:[#allocation7] sm:$0xff]  ;;  %s469_s8 = smov [#allocation8]  }
  0x38   :  { %v62_v5 = vld [vmem:[#allocation2] sm:$0xff]  ;;  %v340_v6 = vpack.c.bf16 %v67_v4, %v66_v2  ;;  %v63_v7 = vld [vmem:[#allocation2 + $0x8] sm:$0xff]  ;;  %v168_v9 = vld [vmem:[#allocation7 + $0x8] sm:$0xff]  ;;  %s271_s9 = sshll.u32 %s469_s8, 4  ;;  %s272_s9 = int_to_ptr.vmem [resolvable:$true] %s271_s9 }
  0x39   :  { %314 = vmatprep.mubr.msk.f32.mxu0 %vm75_vm0, %v62_v5  ;;  %337 = vmatprep.subr.bf16.mxu0 %v336_v3  ;;  %v344_v10 = vpack.c.bf16 %v168_v9, %v167_v8  ;;  %v169_v11 = vld [vmem:[#allocation7 + $0x10] sm:$0xff]  ;;  %v170_v12 = vld [vmem:[#allocation7 + $0x18] sm:$0xff]  ;;  %v171_v14 = vld [vmem:[#allocation7 + $0x20] sm:$0xff]  ;;  %s436_s10 = scalar_lea.vmem %s272_s9, 256  ;;  %p441_p11 = scmp.lt.s32.totalorder %s272_s9, %s272_s9 }
  0x3a   :  { %339 = vmatpush3.bf16.msra.mxu0 %v336_v3  ;;  %v348_v13 = vpack.c.bf16 %v170_v12, %v169_v11  ;;  %v172_v15 = vld [vmem:[#allocation7 + $0x28] sm:$0xff]  ;;  %v173_v17 = vld [vmem:[#allocation7 + $0x30] sm:$0xff]  ;;  %v174_v18 = vld [vmem:[#allocation7 + $0x38] sm:$0xff]  ;;  %p437_p10 = scmp.ne.s32.totalorder %s272_s9, %s436_s10  ;;  %p442_p12 = scmp.lt.s32.totalorder %s436_s10, %s436_s10 }
  0x3b   :  { %341 = vmatprep.subr.bf16.mxu0 %v340_v6  ;;  %345 = vmatprep.subr.bf16.mxu1 %v344_v10  ;;  %v352_v16 = vpack.c.bf16 %v172_v15, %v171_v14  ;;  %v356_v19 = vpack.c.bf16 %v174_v18, %v173_v17  ;;  %v284_v20 = vld [vmem:[%s575_s2] ss:$0 sm:$0xff] }
  0x3c   :  { %347 = vmatpush3.bf16.msra.mxu1 %v344_v10  ;;  %v287_v35 = vld [vmem:[%s577_s4] ss:$0 sm:$0xff]  ;;  %p443_p13 = por %p442_p12, %p441_p11 }
  0x3d   :  { %349 = vmatprep.subr.bf16.mxu1 %v348_v13 }
  0x3e   :  { %343 = vmatpush3.bf16.msra.mxu0 %v340_v6  ;;  %p444_p0 = pnand %p443_p13, %p437_p10 }
  0x40   :  { %351 = vmatpush3.bf16.msra.mxu1 %v348_v13 }
  0x41   :  { %315 = vmatmul.mubr.msk.f32.vlgmr.msra.gmra.mrb[0].mxu0 %vm75_vm0, %v63_v7  ;;  %353 = vmatprep.subr.bf16.mxu1 %v352_v16 }
  0x44   :  { %355 = vmatpush3.bf16.msra.mxu1 %v352_v16 }
  0x45   :  { %357 = vmatprep.subr.bf16.mxu1 %v356_v19 }
  0x48   :  { %359 = vmatpush3.bf16.msra.mxu1 %v356_v19 }
 0x114   :  { %v316_v21 = vpop.f32.mrb[0].mxu0 }
 0x115   :  { %v154_v22 = vadd.f32 %v316_v21, %v284_v20  ;;  %v148_v23 = vpop.f32.mrb[1].mxu0 }
 0x116   :  { %v149_v24 = vadd.f32 %v284_v20, %v148_v23 }
 0x117   :  { %v160_v25 = vmul.f32 0.70710677, %v154_v22  ;;  %v158_v32 = vmul.f32 0.5, %v154_v22 }
 0x118   :  { %v159_v26 = vmul.f32 0.70710677, %v149_v24  ;;  %v157_v30 = vmul.f32 0.5, %v149_v24 }
 0x119   :  { %366 = verf.f32 %v160_v25 }
 0x11a   :  { %368 = verf.f32 %v159_v26 }
 0x123   :  { %v367_v27 = vpop.eup %366 }
 0x124   :  { %v369_v28 = vpop.eup %368  ;;  %v164_v29 = vadd.f32 1.0, %v367_v27 }
 0x125   :  { %v163_v31 = vadd.f32 1.0, %v369_v28 }
 0x126   :  { %v166_v34 = vmul.f32 %v164_v29, %v158_v32 }
 0x127   :  { %v165_v33 = vmul.f32 %v163_v31, %v157_v30 }
 0x129   :  { %333 = vmatprep.mubr.msk.f32.mxu1 %vm182_vm1, %v165_v33 }
 0x12a   :  { %334 = vmatmul.mubr.msk.f32.vlgmr.msra.gmra.mrb[0].mxu1 %vm182_vm1, %v166_v34 }
 0x1fd   :  { %v335_v36 = vpop.f32.mrb[0].mxu1 }
 0x1fe   :  { %v261_v37 = vadd.f32 %v335_v36, %v287_v35  ;;  %v255_v38 = vpop.f32.mrb[1].mxu1 }
 0x1ff   :  { %v256_v39 = vadd.f32 %v287_v35, %v255_v38 }
 0x200   :  { %265 = vst [vmem:[#allocation8 + $0x8] sm:$0xff] %v261_v37 }
 0x201   :  { %264 = vst [vmem:[#allocation8] sm:$0xff] %v256_v39 }
 0x202   :  { %447 = shalt.err (!%p444_p0)
}
 0x203   :  { %s448_s4 = scalar_lea.hbm %s578_s5, 256 }
 0x204   :  { %p449_p1 = scmp.ne.s32.totalorder %s578_s5, %s448_s4  ;;  %p452_p2 = scmp.lt.u32.totalorder %s448_s4, %s578_s5 }
 0x206   :  { %p454_p3 = pnand %p452_p2, %p449_p1 }
 0x208   :  { %457 = shalt.err (!%p454_p3)
}
 0x209   :  { %277 = dma.vmem_to_hbm [thread:$0]  %s272_s9, 256, %s578_s5, [#allocation4], %s466_s30, %s466_s30, %s467_s6  }
 0x20a   :  { %462 = dma.done.wait [#allocation4], 256  }
 0x20b   :  { %463 = vsyncadd [#allocation4], 4294967040 }
 0x20c   :  { %281 = vsyncpa [#allocation3], 1 }
 0x20d   :  { %282 = vsyncpa [#allocation6], 1 }
 0x20e   :  { %283 = vsyncpa [#allocation4], 1 }

</bundles_post_ra>
